<compile_context>
chip_gen: v6e
topology: v6e:2x2x1
jax: 0.10.0
libtpu: 0.0.40
codegen_flags: <defaults>
</compile_context>

<pallas_src>
import functools

import jax
import jax.numpy as jnp
import numpy as np
from jax.experimental import pallas as pl
from jax.experimental.pallas import tpu as pltpu

LANE = 128


def _round_up(x, m):
    return ((x + m - 1) // m) * m


def _vmem_capacity_bytes():
    """Per-TensorCore VMEM capacity; conservative fallback if the query fails."""
    try:
        cap = int(pltpu.get_tpu_info().vmem_capacity_bytes)
        return max(64 << 20, min(cap, 128 << 20))
    except Exception:
        return 64 << 20          # v7x per-core VMEM — safe on every generation


def _fused_fits(S, C, height, itemsize, capacity):
    """Can one batch's branches + output + f32 temporaries live in VMEM?"""
    blocks = 2 * (height + 1) * C * S * itemsize   # double-buffered in/out blocks
    temps = 4 * C * S * 4                          # f32 elementwise intermediates
    return blocks + temps <= int(capacity * 0.55)


def _choose_tile_s(S, C, height, itemsize, capacity, override=None):
    """Lane-aligned S tile from a generation-aware VMEM byte budget."""
    s_ceil = _round_up(S, LANE)
    if override is not None:
        ts = max(LANE, _round_up(int(override), LANE))
    else:
        target = int(capacity * 0.40)              # streaming footprint target
        per_lane = C * (2 * (height + 1) * itemsize + 2 * 4)
        ts = max(LANE, (target // max(per_lane, 1)) // LANE * LANE)
    ts = min(ts, s_ceil)
    n_tiles = -(-S // ts)
    ts = min(s_ceil, _round_up(-(-S // n_tiles), LANE))   # rebalance, less waste
    return ts, n_tiles


def _conv_band_matrix(weight, C):
    """Dense banded matrix A with A[o,c,d] = w[o,0,d-c+pad] (Conv1d over channels)."""
    height, _, K = weight.shape
    pad = K // 2
    w2 = weight.reshape(height, K).astype(jnp.float32)
    diff = jnp.arange(C)[None, :] - jnp.arange(C)[:, None] + pad        # (C, C)
    valid = (diff >= 0) & (diff < K)
    return jnp.where(valid[None], w2[:, jnp.clip(diff, 0, K - 1)], 0.0)  # (h, C, C)


def _col_to_row(col, n):
    """(n,1) -> (1,n) via iota-select + sublane reduce (no transpose primitive)."""
    r = jax.lax.broadcasted_iota(jnp.int32, (n, n), 0)
    c = jax.lax.broadcasted_iota(jnp.int32, (n, n), 1)
    sel = jnp.where(r == c, jnp.broadcast_to(col, (n, n)), 0.0)
    return jnp.sum(sel, axis=0, keepdims=True)


def _fused_kernel(*refs, height, inv_s):
    """One batch, single pass: pooling + Conv1d/softmax head + weighted sum.

    refs = (conv_mat, bias, x_0 ... x_{height-1}, out)
      conv_mat: VMEM (height, C, C) f32   banded Conv1d matrix
      bias:     VMEM (height, 1, 1) f32
      x_h/out:  VMEM (1, C, S)
    """
    conv_ref, bias_ref = refs[0], refs[1]
    x_refs = refs[2:2 + height]
    o_ref = refs[2 + height]
    C = o_ref.shape[1]

    # Channel means over all branches (f32 accumulation, lane reductions).
    pooled = jnp.sum(x_refs[0][0].astype(jnp.float32), axis=-1, keepdims=True)
    for h in range(1, height):
        pooled = pooled + jnp.sum(x_refs[h][0].astype(jnp.float32),
                                  axis=-1, keepdims=True)
    pooled = pooled * inv_s                       # (C, 1)
    pooled_row = _col_to_row(pooled, C)           # (1, C)

    # Conv1d(1, height, K) head as a banded matvec (elementwise mul + lane sum).
    logits = []
    for o in range(height):
        l = jnp.sum(conv_ref[o] * pooled_row, axis=-1, keepdims=True) + bias_ref[o]
        logits.append(l)                          # (C, 1)

    # Softmax over `height` (per channel), numerically stabilized.
    m = logits[0]
    for o in range(1, height):
        m = jnp.maximum(m, logits[o])
    exps = [jnp.exp(l - m) for l in logits]
    denom = exps[0]
    for o in range(1, height):
        denom = denom + exps[o]

    # Attention-weighted sum of the branches ((C,1) broadcast over lanes).
    acc = x_refs[0][0].astype(jnp.float32) * (exps[0] / denom)
    for h in range(1, height):
        acc = acc + x_refs[h][0].astype(jnp.float32) * (exps[h] / denom)
    o_ref[0] = acc.astype(o_ref.dtype)


def _pool_kernel(*refs, height, valid_s, tile_s):
    """Per-(batch, S-tile) channel sums over all branches (ragged tail masked).

    refs = (x_0 ... x_{height-1}, partial_out)
      x_h:         VMEM (1, C, TS)
      partial_out: VMEM (1, 1, C, 1) f32
    """
    x_refs = refs[:height]
    o_ref = refs[height]

    mask = None
    if valid_s % tile_s != 0:
        # Ragged S: the last tile's out-of-range lanes hold unspecified data;
        # mask them out of the channel sums (one VPU select, hidden under DMA).
        limit = valid_s - pl.program_id(1) * tile_s
        lane = jax.lax.broadcasted_iota(jnp.int32, x_refs[0].shape[1:], 1)
        mask = lane < limit

    def branch_sum(h):
        x = x_refs[h][0].astype(jnp.float32)
        if mask is not None:
            x = jnp.where(mask, x, 0.0)
        return jnp.sum(x, axis=-1, keepdims=True)

    total = branch_sum(0)
    for h in range(1, height):
        total = total + branch_sum(h)
    o_ref[0, 0] = total                                          # (C, 1)


def _apply_kernel(*refs, height):
    """out_tile = sum_h attn[h] * x_h_tile  (attention broadcast over lanes).

    refs = (attn, x_0 ... x_{height-1}, out)
      attn: VMEM (1, height, C, 1) f32
      x_h / out: VMEM (1, C, TS)
    """
    attn_ref = refs[0]
    x_refs = refs[1:1 + height]
    o_ref = refs[1 + height]
    acc = x_refs[0][0].astype(jnp.float32) * attn_ref[0, 0]      # (C, TS)
    for h in range(1, height):
        acc = acc + x_refs[h][0].astype(jnp.float32) * attn_ref[0, h]
    o_ref[0] = acc.astype(o_ref.dtype)


def sk_fusion_v2(in_feats, weight, bias, *, force_two_pass=False, tile_s=None):
    """Pallas implementation of SKFusionv2.forward.

    in_feats: list of `height` arrays, each (B, C, D, H, W) (f32 or bf16)
    weight:   (height, 1, K) Conv1d weight
    bias:     (height,)      Conv1d bias
    force_two_pass / tile_s: testing & tuning knobs (default auto).
    returns:  (B, C, D, H, W) in the input dtype
    """
    # TODO(synk): the original PyTorch code does `.permute(0,2,1)` then
    # `.view(B, height, C, 1, 1, 1)`, which is ill-formed for C != height; the
    # evident intent (softmax over the `height` Conv1d outputs, per channel)
    # is implemented here — identical to the validated reference below.
    height = len(in_feats)
    B, C, D, H, W = in_feats[0].shape
    S = D * H * W
    dtype = in_feats[0].dtype
    itemsize = jnp.dtype(dtype).itemsize
    capacity = _vmem_capacity_bytes()
    vmem_limit = int(capacity * 0.85)

    xs = [f.reshape(B, C, S) for f in in_feats]          # free reshape, no copy
    conv_mat = _conv_band_matrix(weight, C)               # (height, C, C) f32
    bias_f32 = bias.astype(jnp.float32)

    if not force_two_pass and _fused_fits(S, C, height, itemsize, capacity):
        # ---- fused single pass: every branch is read from HBM exactly once.
        # TODO(synk): with B == 1 on v7x only one TensorCore gets work; an
        # outer spatial split would break the fused pooling, so it is accepted.
        out = pl.pallas_call(
            functools.partial(_fused_kernel, height=height, inv_s=1.0 / float(S)),
            out_shape=jax.ShapeDtypeStruct((B, C, S), dtype),
            grid=(B,),
            in_specs=([pl.BlockSpec((height, C, C), lambda b: (0, 0, 0)),
                       pl.BlockSpec((height, 1, 1), lambda b: (0, 0, 0))]
                      + [pl.BlockSpec((1, C, S), lambda b: (b, 0, 0))
                         for _ in range(height)]),
            out_specs=pl.BlockSpec((1, C, S), lambda b: (b, 0, 0)),
            compiler_params=pltpu.CompilerParams(
                dimension_semantics=("parallel",),
                vmem_limit_bytes=vmem_limit),
        )(conv_mat, bias_f32.reshape(height, 1, 1), *xs)
        return out.reshape(B, C, D, H, W)

    # ---- two-pass streaming fallback (large S) ------------------------------
    ts, n_tiles = _choose_tile_s(S, C, height, itemsize, capacity, override=tile_s)

    # pass 1: per-(batch, tile) channel sums; ragged tail masked in-kernel.
    partials = pl.pallas_call(
        functools.partial(_pool_kernel, height=height, valid_s=S, tile_s=ts),
        out_shape=jax.ShapeDtypeStruct((B, n_tiles, C, 1), jnp.float32),
        grid=(B, n_tiles),
        in_specs=[pl.BlockSpec((1, C, ts), lambda b, t: (b, 0, t))
                  for _ in range(height)],
        out_specs=pl.BlockSpec((1, 1, C, 1), lambda b, t: (b, t, 0, 0)),
        compiler_params=pltpu.CompilerParams(
            dimension_semantics=("parallel", "parallel"),
            vmem_limit_bytes=vmem_limit),
    )(*xs)

    # tiny attention head in plain JAX: mean -> banded Conv1d -> softmax(height)
    pooled = jnp.sum(partials[..., 0], axis=1) / float(S)            # (B, C)
    logits = jnp.einsum("ocd,bd->boc", conv_mat, pooled) + bias_f32[None, :, None]
    attn = jax.nn.softmax(logits, axis=1).reshape(B, height, C, 1)

    # pass 2: streaming attention-weighted sum; the partial last-tile store is
    # masked by Pallas, so the output is exactly (B, C, S) — no pad / slice.
    out = pl.pallas_call(
        functools.partial(_apply_kernel, height=height),
        out_shape=jax.ShapeDtypeStruct((B, C, S), dtype),
        grid=(B, n_tiles),
        in_specs=([pl.BlockSpec((1, height, C, 1), lambda b, t: (b, 0, 0, 0))]
                  + [pl.BlockSpec((1, C, ts), lambda b, t: (b, 0, t))
                     for _ in range(height)]),
        out_specs=pl.BlockSpec((1, C, ts), lambda b, t: (b, 0, t)),
        compiler_params=pltpu.CompilerParams(
            dimension_semantics=("parallel", "parallel"),
            vmem_limit_bytes=vmem_limit),
    )(attn, *xs)
    return out.reshape(B, C, D, H, W)


def sk_fusion_v2_reference(in_feats, weight, bias):
    """Pure-JAX reference mirroring the intended PyTorch semantics."""
    K = weight.shape[-1]
    pad = K // 2
    x = jnp.stack([f.astype(jnp.float32) for f in in_feats], axis=1)
    feats_sum = jnp.sum(x, axis=1)                               # (B, C, D, H, W)
    pooled = jnp.mean(feats_sum, axis=(2, 3, 4))                 # (B, C)
    logits = jax.lax.conv_general_dilated(
        pooled[:, None, :], weight.astype(jnp.float32), window_strides=(1,),
        padding=[(pad, pad)], dimension_numbers=("NCH", "OIH", "NCH"))
    logits = logits + bias.astype(jnp.float32)[None, :, None]    # (B, height, C)
    attn = jax.nn.softmax(logits, axis=1)
    return jnp.sum(x * attn[:, :, :, None, None, None], axis=1)


if __name__ == "__main__":
    key = jax.random.PRNGKey(0)

    # --- test 1: f32, lane-aligned spatial size, fused single-pass path ------
    B, C, D, H, W = 2, 8, 4, 8, 8          # S = 256
    height, K = 2, 3
    k1, k2, k3, k4 = jax.random.split(key, 4)
    feats = [jax.random.normal(k1, (B, C, D, H, W), jnp.float32),
             jax.random.normal(k2, (B, C, D, H, W), jnp.float32)]
    weight = jax.random.normal(k3, (height, 1, K), jnp.float32) * 0.5
    bias = jax.random.normal(k4, (height,), jnp.float32) * 0.1
    ref = sk_fusion_v2_reference(feats, weight, bias)

    out = jax.block_until_ready(sk_fusion_v2(feats, weight, bias))
    assert out.shape == (B, C, D, H, W) and out.dtype == jnp.float32
    np.testing.assert_allclose(np.asarray(out), np.asarray(ref),
                               rtol=1e-4, atol=1e-4)

    # --- test 2: same inputs through the two-pass streaming fallback ---------
    out_tp = jax.block_until_ready(
        sk_fusion_v2(feats, weight, bias, force_two_pass=True))
    np.testing.assert_allclose(np.asarray(out_tp), np.asarray(ref),
                               rtol=1e-4, atol=1e-4)

    # --- test 3: ragged spatial size (S=273), height=3, fused path -----------
    B2, C2, D2, H2, W2 = 1, 8, 3, 7, 13    # S = 273 (not a multiple of 128)
    h2, K2 = 3, 3
    j1, j2, j3, j4, j5 = jax.random.split(jax.random.PRNGKey(1), 5)
    feats2 = [jax.random.normal(j, (B2, C2, D2, H2, W2), jnp.float32)
              for j in (j1, j2, j3)]
    w2_ = jax.random.normal(j4, (h2, 1, K2), jnp.float32) * 0.5
    b2_ = jax.random.normal(j5, (h2,), jnp.float32) * 0.1
    ref2 = sk_fusion_v2_reference(feats2, w2_, b2_)

    out2 = jax.block_until_ready(sk_fusion_v2(feats2, w2_, b2_))
    np.testing.assert_allclose(np.asarray(out2), np.asarray(ref2),
                               rtol=1e-4, atol=1e-4)

    # --- test 4: ragged S, forced two-pass, multiple tiles (masked tail) -----
    out2_tp = jax.block_until_ready(
        sk_fusion_v2(feats2, w2_, b2_, force_two_pass=True, tile_s=128))
    np.testing.assert_allclose(np.asarray(out2_tp), np.asarray(ref2),
                               rtol=1e-4, atol=1e-4)

    # --- test 5: bf16 streaming (f32 accumulation inside the kernels) --------
    feats_bf = [f.astype(jnp.bfloat16) for f in feats]
    out_bf = jax.block_until_ready(sk_fusion_v2(feats_bf, weight, bias))
    assert out_bf.dtype == jnp.bfloat16
    np.testing.assert_allclose(np.asarray(out_bf, dtype=np.float32),
                               np.asarray(ref), rtol=6e-2, atol=6e-2)

    print("KERNEL_OK")
</pallas_src>

<mosaic_0001>
module attributes {stable_mosaic.version = 11 : i64} {
  func.func @_fused_kernel(%arg0: i32, %arg1: memref<2x8x8xf32, #tpu.memory_space<vmem>>, %arg2: memref<2x1x1xf32, #tpu.memory_space<vmem>>, %arg3: memref<1x8x256xf32, #tpu.memory_space<vmem>>, %arg4: memref<1x8x256xf32, #tpu.memory_space<vmem>>, %arg5: memref<1x8x256xf32, #tpu.memory_space<vmem>>) attributes {dimension_semantics = [#tpu.dimension_semantics<parallel>], iteration_bounds = array<i64: 2>, scalar_prefetch = 0 : i64, scratch_operands = 0 : i64, tpu.core_type = #tpu.core_type<tc>, window_params = [{pipeline_mode = #tpu.pipeline_mode<synchronous>, transform_indices = @transform_0, window_bounds = array<i64: 2, 8, 8>}, {pipeline_mode = #tpu.pipeline_mode<synchronous>, transform_indices = @transform_1, window_bounds = array<i64: 2, 1, 1>}, {transform_indices = @transform_2, window_bounds = array<i64: 1, 8, 256>}, {transform_indices = @transform_3, window_bounds = array<i64: 1, 8, 256>}, {transform_indices = @transform_4, window_bounds = array<i64: 1, 8, 256>}]} {
    %c0 = arith.constant 0 : index
    %c0_0 = arith.constant 0 : index
    %c0_1 = arith.constant 0 : index
    %0 = vector.load %arg3[%c0, %c0_0, %c0_1] : memref<1x8x256xf32, #tpu.memory_space<vmem>>, vector<1x8x256xf32>
    %1 = vector.shape_cast %0 : vector<1x8x256xf32> to vector<8x256xf32>
    %cst = arith.constant dense<0.000000e+00> : vector<8xf32>
    %2 = vector.multi_reduction <add>, %1, %cst [1] : vector<8x256xf32> to vector<8xf32>
    %3 = vector.shape_cast %2 : vector<8xf32> to vector<8x1xf32>
    %c0_2 = arith.constant 0 : index
    %c0_3 = arith.constant 0 : index
    %c0_4 = arith.constant 0 : index
    %4 = vector.load %arg4[%c0_2, %c0_3, %c0_4] : memref<1x8x256xf32, #tpu.memory_space<vmem>>, vector<1x8x256xf32>
    %5 = vector.shape_cast %4 : vector<1x8x256xf32> to vector<8x256xf32>
    %cst_5 = arith.constant dense<0.000000e+00> : vector<8xf32>
    %6 = vector.multi_reduction <add>, %5, %cst_5 [1] : vector<8x256xf32> to vector<8xf32>
    %7 = vector.shape_cast %6 : vector<8xf32> to vector<8x1xf32>
    %8 = arith.addf %3, %7 : vector<8x1xf32>
    %cst_6 = arith.constant 3.906250e-03 : f32
    %9 = vector.broadcast %cst_6 : f32 to vector<8x1xf32>
    %10 = arith.mulf %8, %9 : vector<8x1xf32>
    %11 = tpu.iota {dimensions = array<i32: 0>} : vector<8x8xi32>
    %12 = tpu.iota {dimensions = array<i32: 1>} : vector<8x8xi32>
    %13 = arith.cmpi eq, %11, %12 : vector<8x8xi32>
    %14 = vector.shape_cast %10 : vector<8x1xf32> to vector<8x1xf32>
    %15 = vector.broadcast %14 : vector<8x1xf32> to vector<8x8xf32>
    %cst_7 = arith.constant 0.000000e+00 : f32
    %16 = vector.broadcast %cst_7 : f32 to vector<8x8xf32>
    %17 = arith.select %13, %15, %16 : vector<8x8xi1>, vector<8x8xf32>
    %cst_8 = arith.constant dense<0.000000e+00> : vector<8xf32>
    %18 = vector.multi_reduction <add>, %17, %cst_8 [0] : vector<8x8xf32> to vector<8xf32>
    %19 = vector.shape_cast %18 : vector<8xf32> to vector<1x8xf32>
    %c0_9 = arith.constant 0 : index
    %c0_10 = arith.constant 0 : index
    %c0_11 = arith.constant 0 : index
    %20 = vector.load %arg1[%c0_9, %c0_10, %c0_11] : memref<2x8x8xf32, #tpu.memory_space<vmem>>, vector<1x8x8xf32>
    %21 = vector.shape_cast %20 : vector<1x8x8xf32> to vector<8x8xf32>
    %22 = vector.broadcast %19 : vector<1x8xf32> to vector<8x8xf32>
    %23 = arith.mulf %21, %22 : vector<8x8xf32>
    %cst_12 = arith.constant dense<0.000000e+00> : vector<8xf32>
    %24 = vector.multi_reduction <add>, %23, %cst_12 [1] : vector<8x8xf32> to vector<8xf32>
    %25 = vector.shape_cast %24 : vector<8xf32> to vector<8x1xf32>
    %c0_13 = arith.constant 0 : index
    %c0_14 = arith.constant 0 : index
    %c0_15 = arith.constant 0 : index
    %26 = vector.load %arg2[%c0_13, %c0_14, %c0_15] : memref<2x1x1xf32, #tpu.memory_space<vmem>>, vector<1x1x1xf32>
    %27 = vector.shape_cast %26 : vector<1x1x1xf32> to vector<1x1xf32>
    %28 = vector.broadcast %27 : vector<1x1xf32> to vector<8x1xf32>
    %29 = arith.addf %25, %28 : vector<8x1xf32>
    %c1 = arith.constant 1 : index
    %c0_16 = arith.constant 0 : index
    %c0_17 = arith.constant 0 : index
    %30 = vector.load %arg1[%c1, %c0_16, %c0_17] : memref<2x8x8xf32, #tpu.memory_space<vmem>>, vector<1x8x8xf32>
    %31 = vector.shape_cast %30 : vector<1x8x8xf32> to vector<8x8xf32>
    %32 = vector.broadcast %19 : vector<1x8xf32> to vector<8x8xf32>
    %33 = arith.mulf %31, %32 : vector<8x8xf32>
    %cst_18 = arith.constant dense<0.000000e+00> : vector<8xf32>
    %34 = vector.multi_reduction <add>, %33, %cst_18 [1] : vector<8x8xf32> to vector<8xf32>
    %35 = vector.shape_cast %34 : vector<8xf32> to vector<8x1xf32>
    %c1_19 = arith.constant 1 : index
    %c0_20 = arith.constant 0 : index
    %c0_21 = arith.constant 0 : index
    %36 = vector.load %arg2[%c1_19, %c0_20, %c0_21] : memref<2x1x1xf32, #tpu.memory_space<vmem>>, vector<1x1x1xf32>
    %37 = vector.shape_cast %36 : vector<1x1x1xf32> to vector<1x1xf32>
    %38 = vector.broadcast %37 : vector<1x1xf32> to vector<8x1xf32>
    %39 = arith.addf %35, %38 : vector<8x1xf32>
    %40 = arith.maximumf %29, %39 : vector<8x1xf32>
    %41 = arith.subf %29, %40 : vector<8x1xf32>
    %42 = math.exp %41 : vector<8x1xf32>
    %43 = arith.subf %39, %40 : vector<8x1xf32>
    %44 = math.exp %43 : vector<8x1xf32>
    %45 = arith.addf %42, %44 : vector<8x1xf32>
    %c0_22 = arith.constant 0 : index
    %c0_23 = arith.constant 0 : index
    %c0_24 = arith.constant 0 : index
    %46 = vector.load %arg3[%c0_22, %c0_23, %c0_24] : memref<1x8x256xf32, #tpu.memory_space<vmem>>, vector<1x8x256xf32>
    %47 = vector.shape_cast %46 : vector<1x8x256xf32> to vector<8x256xf32>
    %48 = arith.divf %42, %45 : vector<8x1xf32>
    %49 = vector.broadcast %48 : vector<8x1xf32> to vector<8x256xf32>
    %50 = arith.mulf %47, %49 : vector<8x256xf32>
    %c0_25 = arith.constant 0 : index
    %c0_26 = arith.constant 0 : index
    %c0_27 = arith.constant 0 : index
    %51 = vector.load %arg4[%c0_25, %c0_26, %c0_27] : memref<1x8x256xf32, #tpu.memory_space<vmem>>, vector<1x8x256xf32>
    %52 = vector.shape_cast %51 : vector<1x8x256xf32> to vector<8x256xf32>
    %53 = arith.divf %44, %45 : vector<8x1xf32>
    %54 = vector.broadcast %53 : vector<8x1xf32> to vector<8x256xf32>
    %55 = arith.mulf %52, %54 : vector<8x256xf32>
    %56 = arith.addf %50, %55 : vector<8x256xf32>
    %c0_28 = arith.constant 0 : index
    %c0_29 = arith.constant 0 : index
    %c0_30 = arith.constant 0 : index
    %57 = vector.load %arg5[%c0_28, %c0_29, %c0_30] : memref<1x8x256xf32, #tpu.memory_space<vmem>>, vector<1x8x256xf32>
    %58 = vector.shape_cast %57 : vector<1x8x256xf32> to vector<8x256xf32>
    %59 = vector.shape_cast %56 : vector<8x256xf32> to vector<1x8x256xf32>
    tpu.vector_store %arg5[%c0_28, %c0_29, %c0_30], %59 {strides = array<i32>} : memref<1x8x256xf32, #tpu.memory_space<vmem>>, vector<1x8x256xf32>,
    return
  }
  func.func @transform_0(%arg0: i32) -> (i32, i32, i32) {
    %c0_i32 = arith.constant 0 : i32
    %c0_i32_0 = arith.constant 0 : i32
    %c0_i32_1 = arith.constant 0 : i32
    %c0_i32_2 = arith.constant 0 : i32
    return %c0_i32, %c0_i32_0, %c0_i32_1 : i32, i32, i32
  }
  func.func @transform_1(%arg0: i32) -> (i32, i32, i32) {
    %c0_i32 = arith.constant 0 : i32
    %c0_i32_0 = arith.constant 0 : i32
    %c0_i32_1 = arith.constant 0 : i32
    %c0_i32_2 = arith.constant 0 : i32
    return %c0_i32, %c0_i32_0, %c0_i32_1 : i32, i32, i32
  }
  func.func @transform_2(%arg0: i32) -> (i32, i32, i32) {
    %c0_i32 = arith.constant 0 : i32
    %c0_i32_0 = arith.constant 0 : i32
    %c0_i32_1 = arith.constant 0 : i32
    return %arg0, %c0_i32, %c0_i32_0 : i32, i32, i32
  }
  func.func @transform_3(%arg0: i32) -> (i32, i32, i32) {
    %c0_i32 = arith.constant 0 : i32
    %c0_i32_0 = arith.constant 0 : i32
    %c0_i32_1 = arith.constant 0 : i32
    return %arg0, %c0_i32, %c0_i32_0 : i32, i32, i32
  }
  func.func @transform_4(%arg0: i32) -> (i32, i32, i32) {
    %c0_i32 = arith.constant 0 : i32
    %c0_i32_0 = arith.constant 0 : i32
    %c0_i32_1 = arith.constant 0 : i32
    return %arg0, %c0_i32, %c0_i32_0 : i32, i32, i32
  }
}

</mosaic_0001>

<bundles_post_ra>
// kernel: tpu_custom_call.1
= control target key start
LH: loop header
LB: loop body
LE: loop exit
PB: predicated region body
PF: predicated region fallthrough
CT: control target
= control target key end

     0   :  { %9 = vsyncpa [#allocation3], 0  ;;  %s979_s0 = inlined_call_operand.hbm [shape: f32[2,8,8], index: 0, kind: input, shape index: {}]   ;;  %s980_s1 = inlined_call_operand.vmem [shape: f32[2,1,1], index: 1, kind: input, shape index: {}]   ;;  %s981_s2 = inlined_call_operand.hbm [shape: f32[2,8,256], index: 2, kind: input, shape index: {}]   ;;  %s982_s3 = inlined_call_operand.hbm [shape: f32[2,8,256], index: 3, kind: input, shape index: {}]   ;;  %s983_s4 = inlined_call_operand.hbm [shape: f32[2,8,256], index: 4, kind: output, shape index: {}]  }
   0x1   :  { %10 = vsyncpa [#allocation6], 0 }
   0x2   :  { %12 = vsyncpa [#allocation6 + $0x1], 0 }
   0x3   :  { %13 = vsyncpa [#allocation4], 0 }
   0x4   :  { %15 = vsyncpa [#allocation4 + $0x1], 0  ;;  %s747_s15 = smov 0   ;;  %s749_s16 = smov 0  }
   0x5   :  { %s751_s17 = smov 0   ;;  %s753_s18 = smov 0  }
   0x6 LB: > { %s768_s19 = sadd.s32 1, %s713_s18   ;;  %s70_s20 = sadd.s32 1, %s709_s17  ;;  %s713_s18 = sphi %s753_s18, %s1008_s18   ;;  %s709_s17 = sphi %s751_s17, %s1007_s17   ;;  %s705_s16 = sphi %s749_s16, %s1006_s16   ;;  %s701_s15 = sphi %s747_s15, %s1005_s15  }
   0x7   : > { %s67_s21 = ssub.s32 %s713_s18, %s768_s19  ;;  %p984_p0 = scmp.ne.s32.totalorder %s709_s17, %s705_s16 }
   0x8   : > { %p68_p1 = scmp.eq.s32.totalorder %s67_s21, 0  ;;  %p78_p2 = scmp.eq.s32.totalorder %s713_s18, 0 }
   0x9   : > { %p516_p4 = scmp.lt.s32.totalorder %s713_s18, 2  ;;  %s175_s23 = sand.u32 1, %s713_s18  }
   0xa   : > { %s779_s22 = scalar_select %p68_p1, %s709_s17, %s70_s20  }
   0xb   : > { %p79_p5 = por %p78_p2, %p984_p0  ;;  %s177_s24 = sand.u32 1, %s709_s17  }
   0xc   : > { %s786_s25 = sshll.u32 %s177_s24, 4  ;;  %s487_s26 = sshll.u32 %s713_s18, 8 }
   0xd   : > { %s794_s29 = scalar_lea.hbm %s981_s2, %s487_s26  ;;  %s179_s30 = scalar_lea.vmem [#allocation5], %s786_s25 }
   0xe   : > { %s187_s5 = sshll.u32 %s179_s30, 4  ;;  %p797_p6 = pnand %p516_p4, %p79_p5  ;;  %s188_s5 = int_to_ptr.vmem [resolvable:$true] %s187_s5 }
   0xf   : > { %s801_s7 = scalar_lea.sflag [#allocation6], %s175_s23  ;;  %s563_s8 = scalar_lea.hbm %s794_s29, 256 }
  0x10   : > { %p564_p7 = scmp.ne.s32.totalorder %s794_s29, %s563_s8  ;;  %p565_p8 = pneg %p797_p6 }
  0x11   : > { %s568_s11 = scalar_lea.hbm %s981_s2, 512  ;;  %p569_p11 = scmp.lt.s32.totalorder %s794_s29, %s981_s2 }
  0x12   : > { %p566_p9 = pnand %p565_p8, %p564_p7  ;;  %p570_p12 = scmp.lt.s32.totalorder %s568_s11, %s563_s8 }
  0x14   : > { %p567_p10 = pneg %p566_p9  ;;  %p571_p13 = por %p570_p12, %p569_p11 }
  0x16   : > { %p572_p1 = pnand %p571_p13, %p567_p10 }
  0x18   : > { %575 = shalt.err (!%p572_p1)
}
  0x19   : > { %s576_s14 = scalar_lea.vmem %s188_s5, 256  ;;  %s715_s20 = smov [#allocation5]  }
  0x1a   : > { %p577_p2 = scmp.ne.s32.totalorder %s188_s5, %s576_s14  ;;  %s581_s21 = sshll.u32 %s715_s20, 4  ;;  %s582_s21 = int_to_ptr.vmem [resolvable:$false] %s581_s21 }
  0x1b   : > { %s583_s23 = scalar_lea.vmem %s582_s21, 512  ;;  %p584_p7 = scmp.lt.s32.totalorder %s188_s5, %s582_s21 }
  0x1c   : > { %p579_p4 = pnand %p577_p2, %p565_p8  ;;  %p585_p9 = scmp.lt.s32.totalorder %s583_s23, %s576_s14 }
  0x1e   : > { %p580_p5 = pneg %p579_p4  ;;  %p586_p3 = por %p585_p9, %p584_p7 }
  0x20   : > { %p587_p0 = pnand %p586_p3, %p580_p5 }
  0x22   : > { %590 = shalt.err (!%p587_p0)
}
  0x23   : > { %507 = dma.hbm_to_vmem [thread:$0]  (!%p797_p6), %s794_s29, 256, %s188_s5, %s801_s7  }
  0x24   : > { %s825_s24 = sadd.s32 4294967295, %s713_s18   ;;  %s464_s27 = sadd.s32 4294967294, %s713_s18  }
  0x25   : > { %p83_p0 = scmp.ne.s32.totalorder %s705_s16, %s701_s15  ;;  %p985_p3 = scmp.eq.s32.totalorder %s825_s24, 0 }
  0x26   : > { %p133_p10 = scmp.eq.s32.totalorder %s825_s24, 1  ;;  %p139_p11 = scmp.eq.s32.totalorder %s464_s27, 1 }
  0x27   : > { %p834_p12 = por %p985_p3, %p83_p0  ;;  %p465_p13 = scmp.ge.s32.totalorder %s713_s18, 1 }
  0x28   : > { %p992_p1 = scmp.ne.s32.totalorder %s709_s17, %s705_s16  ;;  %p846_p4 = por %p139_p11, %p83_p0 }
  0x29   : > { %s991_s28 = scalar_select %p834_p12, 1, 0 }
  0x2a   : > { %p842_p2 = por %p133_p10, %p992_p1  ;;  %p146_p5 = scmp.lt.s32.totalorder %s713_s18, 3 }
  0x2b   : > { %s994_s30 = scalar_select %p846_p4, 1, 0 }
  0x2c   : > { %s993_s29 = scalar_select %p842_p2, 1, 0 }
  0x2d   : > { %p851_p7 = pnand %p465_p13, %p146_p5  ;;  %s716_s8 = smov [#allocation2]  }
  0x2e   : > { %s158_s9 = sshll.u32 %s716_s8, 4  ;;  %s860_s12 = scalar_lea.hbm %s982_s3, %s487_s26  ;;  %s865_s9 = int_to_ptr.vmem [resolvable:$true] %s158_s9 }
  0x2f   : > { %s995_s5 = scalar_select %p851_p7, 1, 0 }
  0x30   : > { %p500_p9 = pneg %p851_p7  ;;  %s198_s13 = scalar_lea.vmem [#allocation7], %s786_s25 }
  0x31   : > { %s206_s14 = sshll.u32 %s198_s13, 4  ;;  %s591_s21 = scalar_lea.hbm %s860_s12, 256  ;;  %s207_s14 = int_to_ptr.vmem [resolvable:$true] %s206_s14 }
  0x32   : > { %p869_p0 = pnand %p500_p9, %p985_p3  ;;  %p592_p10 = scmp.ne.s32.totalorder %s860_s12, %s591_s21 }
  0x33   : > { %s596_s27 = scalar_lea.hbm %s982_s3, 512  ;;  %p597_p1 = scmp.lt.s32.totalorder %s860_s12, %s982_s3 }
  0x34   : > { %s996_s20 = scalar_select %p869_p0, 1, 0 }
  0x35   : > { %p594_p11 = pnand %p592_p10, %p565_p8  ;;  %p598_p5 = scmp.lt.s32.totalorder %s596_s27, %s591_s21 }
  0x37   : > { %p595_p13 = pneg %p594_p11  ;;  %p599_p4 = por %p598_p5, %p597_p1 }
  0x39   : > { %p600_p9 = pnand %p599_p4, %p595_p13 }
  0x3b   : > { %603 = shalt.err (!%p600_p9)
}
  0x3c   : > { %s604_s10 = scalar_lea.vmem %s207_s14, 256  ;;  %s717_s11 = smov [#allocation7]  }
  0x3d   : > { %p605_p3 = scmp.ne.s32.totalorder %s207_s14, %s604_s10  ;;  %s609_s13 = sshll.u32 %s717_s11, 4  ;;  %s610_s13 = int_to_ptr.vmem [resolvable:$false] %s609_s13 }
  0x3e   : > { %s611_s26 = scalar_lea.vmem %s610_s13, 512  ;;  %p612_p11 = scmp.lt.s32.totalorder %s207_s14, %s610_s13 }
  0x3f   : > { %p607_p2 = pnand %p605_p3, %p565_p8  ;;  %p613_p12 = scmp.lt.s32.totalorder %s611_s26, %s604_s10 }
  0x41   : > { %p608_p10 = pneg %p607_p2  ;;  %p614_p7 = por %p613_p12, %p612_p11 }
  0x43   : > { %p615_p0 = pnand %p614_p7, %p608_p10 }
  0x45   : > { %618 = shalt.err (!%p615_p0)
}
  0x46   : > { %510 = dma.hbm_to_vmem [thread:$0]  (!%p797_p6), %s860_s12, 256, %s207_s14, %s801_s7  }
  0x47   : > { %p997_p8 = scmp.ne.s32.totalorder %s996_s20, 0  ;;  %s630_s21 = scalar_lea.vmem %s865_s9, 256 }
  0x48   : > { %p631_p2 = scmp.ne.s32.totalorder %s865_s9, %s630_s21  ;;  %p638_p1 = scmp.lt.s32.totalorder %s865_s9, %s865_s9 }
  0x49   : > { %p621_p3 = pneg %p997_p8  ;;  %p639_p12 = scmp.lt.s32.totalorder %s630_s21, %s630_s21 }
  0x4b   : > { %p633_p4 = pnand %p631_p2, %p621_p3  ;;  %p640_p7 = por %p639_p12, %p638_p1 }
  0x4d   : > { %p634_p13 = pneg %p633_p4 }
  0x4f   : > { %p641_p0 = pnand %p640_p7, %p634_p13 }
  0x51   : > { %644 = shalt.err (!%p641_p0)
}
  0x52   : > { %s718_s6 = smov 128   ;;  %s719_s23 = smov 8  }
  0x53   : > { %503 = dma.hbm_to_vmem [thread:$0]  (!%p997_p8), %s979_s0, 256, %s865_s9, [#allocation3], %s718_s6, %s718_s6, %s719_s23  }
  0x54   : > { %p998_p6 = scmp.ne.s32.totalorder %s995_s5, 0 }
  0x55   : > { %p999_p5 = scmp.eq.s32.totalorder (!%p998_p6), %s825_s24, 0 }
  0x56   : > { %215 = sbr.rel (%p998_p6) target bundleno = 587 (0x24b), region = 36 }
  0x5b   : > { %688 = dma.done.wait (%p999_p5), [#allocation3], 256   ;;  %p1000_p9 = pmov %p999_p5 }
  0x5c   : > { %s221_s7 = sand.u32 1, %s825_s24   ;;  %s223_s12 = sand.u32 1, %s705_s16  }
  0x5d   : > { %690 = vsyncadd (%p1000_p9), [#allocation3], 4294967040  ;;  %s914_s14 = sshll.u32 %s223_s12, 4  ;;  %s222_s9 = scalar_lea.sflag [#allocation6], %s221_s7 }
  0x5e   : > { %s225_s20 = scalar_lea.vmem [#allocation5], %s914_s14  ;;  %p1001_p10 = scmp.ne.s32.totalorder %s991_s28, 0 }
  0x60   : > { %692 = dma.done.wait (%p1001_p10), %s222_s9, 512  }
  0x61   : > { %694 = vsyncadd (%p1001_p10), %s222_s9, 4294966784  ;;  %v921_v0 = vld [vmem:[%s225_s20] sm:$0xff]  ;;  %v923_v1 = vld [vmem:[%s225_s20 + $0x8] sm:$0xff]  ;;  %s234_s5 = scalar_lea.vmem [#allocation7], %s914_s14  ;;  %v276_v6 = vlaneseq  ;;  %vm282_vm1 = vcmask 64512   ;;  %v720_v27 = vmov 0  }
  0x62   : > { %v269_v2 = vld [vmem:[%s234_s5] sm:$0xff]  ;;  %v266_v3 = vadd.f32 %v923_v1, %v921_v0  ;;  %v270_v4 = vld [vmem:[%s234_s5 + $0x8] sm:$0xff]  ;;  %556 = vset.pattern.permute.xlu1 %v720_v27  ;;  %555 = vset.pattern.permute.xlu0 %v720_v27  ;;  %s489_s13 = sshll.u32 %s825_s24, 8  ;;  %s263_s26 = scalar_lea.vmem [#allocation8], %s914_s14 }
  0x63   : > { %v271_v5 = vadd.f32 %v270_v4, %v269_v2  ;;  %v277_v8 = vshrl.u32 %v276_v6, 7  ;;  %v279_v9 = vand.u32 127, %v276_v6  ;;  %v290_v20 = vld [vmem:[#allocation2] sm:$0xff]  ;;  %v304_v22 = vld [vmem:[#allocation2 + $0x8] sm:$0xff]  ;;  %s362_s21 = sshll.u32 %s263_s26, 4  ;;  %s941_s27 = scalar_lea.hbm %s983_s4, %s489_s13  ;;  %s363_s21 = int_to_ptr.vmem [resolvable:$true] %s362_s21 }
  0x64   : > { %267 = vadd.xlane.f32.xlu0 %v266_v3  ;;  %v479_v29 = vld [vmem:[%s980_s1] ss:$0 sm:$0xff]  ;;  %v481_v30 = vld [vmem:[%s980_s1 + $0x1] ss:$0 sm:$0xff]  ;;  %s348_s24 = scalar_lea.sflag [#allocation4], %s223_s12  ;;  %s645_s25 = scalar_lea.vmem %s363_s21, 256 }
  0x65   : > { %vm280_vm0 = vcmp.eq.s32.totalorder %v277_v8, %v279_v9  ;;  %p646_p11 = scmp.ne.s32.totalorder %s363_s21, %s645_s25  ;;  %p1002_p8 = scmp.ne.s32.totalorder %s993_s29, 0 }
  0x66   : > { %s721_s7 = smov [#allocation8]  }
  0x67   : > { %p647_p3 = pnand %p646_p11, %p1002_p8  ;;  %s649_s14 = sshll.u32 %s721_s7, 4  ;;  %s650_s14 = int_to_ptr.vmem [resolvable:$false] %s649_s14 }
  0x68   : > { %272 = vadd.xlane.f32.xlu0 %v271_v5  ;;  %s651_s9 = scalar_lea.vmem %s650_s14, 512  ;;  %p652_p4 = scmp.lt.s32.totalorder %s363_s21, %s650_s14 }
  0x69   : > { %p648_p2 = pneg %p647_p3  ;;  %p653_p13 = scmp.lt.s32.totalorder %s651_s9, %s645_s25 }
  0x6b   : > { %p654_p1 = por %p653_p13, %p652_p4 }
  0x6d   : > { %p655_p12 = pnand %p654_p1, %p648_p2 }
  0xed   : > { %v268_v7 = vpop.xlane.xlu0 %267 }
  0xf1   : > { %v273_v10 = vpop.xlane.xlu0 %272 }
  0xf2   : > { %v274_v11 = vadd.f32 %v273_v10, %v268_v7 }
  0xf4   : > { %v275_v12 = vmul.f32 0.00390625, %v274_v11 }
  0xf6   : > { %v281_v13 = vsel %vm280_vm0, %v275_v12, 0.0 }
  0xf7   : > { %v283_v14 = vsel %vm282_vm1, %v281_v13, 0.0 }
  0xf8   : > { %v284_v15 = vrot.slane %v283_v14, 4 }
  0xfa   : > { %v285_v16 = vadd.f32 %v284_v15, %v283_v14 }
  0xfc   : > { %v286_v17 = vrot.slane %v285_v16, 2 }
  0xfe   : > { %v287_v18 = vadd.f32 %v286_v17, %v285_v16 }
 0x100   : > { %v288_v19 = vrot.slane %v287_v18, 1 }
 0x102   : > { %v289_v21 = vadd.f32 %v288_v19, %v287_v18 }
 0x104   : > { %v291_v23 = vmul.f32 %v290_v20, %v289_v21  ;;  %v305_v25 = vmul.f32 %v304_v22, %v289_v21 }
 0x106   : > { %v292_v24 = vsel %vm282_vm1, %v291_v23, 0.0  ;;  %v306_v26 = vsel %vm282_vm1, %v305_v25, 0.0 }
 0x107   : > { %293 = vadd.xlane.f32.xlu1 %v292_v24 }
 0x10b   : > { %307 = vadd.xlane.f32.xlu1 %v306_v26 }
 0x190   : > { %v294_v28 = vpop.xlane.xlu1 %293 }
 0x191   : > { %v302_v32 = vadd.f32 %v479_v29, %v294_v28 }
 0x194   : > { %v308_v31 = vpop.xlane.xlu1 %307 }
 0x195   : > { %v317_v33 = vadd.f32 %v481_v30, %v308_v31 }
 0x197   : > { %v318_v34 = vmax.f32 %v302_v32, %v317_v33 }
 0x199   : > { %v319_v35 = vsub.f32 %v302_v32, %v318_v34  ;;  %v322_v36 = vsub.f32 %v317_v33, %v318_v34 }
 0x19b   : > { %v320_v37 = vmul.f32 1.442695, %v319_v35  ;;  %v323_v38 = vmul.f32 1.442695, %v322_v36 }
 0x19d   : > { %557 = vpow2.f32 %v320_v37 }
 0x19e   : > { %559 = vpow2.f32 %v323_v38 }
 0x1aa   : > { %v558_v39 = vpop.eup %557 }
 0x1ab   : > { %v560_v40 = vpop.eup %559 }
 0x1ac   : > { %v325_v41 = vadd.f32 %v560_v40, %v558_v39 }
 0x1ae   : > { %561 = vrcp.f32 %v325_v41 }
 0x1bb   : > { %v562_v42 = vpop.eup %561 }
 0x1bc   : > { %v335_v43 = vmul.f32 %v562_v42, %v560_v40  ;;  %v327_v44 = vmul.f32 %v562_v42, %v558_v39 }
 0x1be   : > { %338 = vperm.xlu1 %556, %v335_v43   ;;  %330 = vperm.xlu0 %555, %v327_v44  }
 0x239   : > { %v339_v45 = vpop.permute.xlu1 %338  ;;  %v331_v46 = vpop.permute.xlu0 %330 }
 0x23a   : > { %v341_v47 = vmul.f32 %v339_v45, %v269_v2  ;;  %v342_v48 = vmul.f32 %v339_v45, %v270_v4  ;;  %v333_v49 = vmul.f32 %v331_v46, %v921_v0  ;;  %v334_v50 = vmul.f32 %v331_v46, %v923_v1 }
 0x23c   : > { %v343_v51 = vadd.f32 %v341_v47, %v333_v49  ;;  %v344_v52 = vadd.f32 %v342_v48, %v334_v50 }
 0x23e   : > { %345 = vst [vmem:[%s263_s26] sm:$0xff] %v343_v51  ;;  %346 = vst [vmem:[%s263_s26 + $0x8] sm:$0xff] %v344_v52 }
 0x23f   : > { %658 = shalt.err (!%p655_p12)
}
 0x240   : > { %s659_s20 = scalar_lea.hbm %s941_s27, 256  ;;  %s663_s28 = scalar_lea.hbm %s983_s4, 512 }
 0x241   : > { %p660_p7 = scmp.ne.s32.totalorder %s941_s27, %s659_s20  ;;  %p664_p5 = scmp.lt.s32.totalorder %s941_s27, %s983_s4 }
 0x242   : > { %p665_p9 = scmp.lt.s32.totalorder %s663_s28, %s659_s20 }
 0x243   : > { %p661_p0 = pnand %p660_p7, %p1002_p8 }
 0x244   : > { %p666_p10 = por %p665_p9, %p664_p5 }
 0x245   : > { %p662_p6 = pneg %p661_p0 }
 0x247   : > { %p667_p11 = pnand %p666_p10, %p662_p6 }
 0x249   : > { %670 = shalt.err (!%p667_p11)
}
 0x24a   : > { %498 = dma.vmem_to_hbm [thread:$0]  (%p1002_p8), %s363_s21, 256, %s941_s27, %s348_s24  }
 0x24b PF: > { %s374_s11 = sand.u32 1, %s701_s15   ;;  %p1003_p3 = scmp.ne.s32.totalorder %s994_s30, 0 }
 0x24c   : > { %p1004_p2 = scmp.ge.s32.totalorder %s713_s18, 2  ;;  %s375_s13 = scalar_lea.sflag [#allocation4], %s374_s11 }
 0x24e   : > { %p512_p4 = pnand %p1004_p2, %p1003_p3 }
 0x250   : > { %p513_p13 = pneg %p512_p4 }
 0x252   : > { %696 = dma.done.wait (%p513_p13), %s375_s13, 256  }
 0x253   : > { %698 = vsyncadd (%p513_p13), %s375_s13, 4294967040  ;;  %p18_p1 = scmp.ge.s32.totalorder %s768_s19, 4   ;;  %s1005_s15 = smov %s705_s16 }
 0x254   : > { %s1006_s16 = smov %s709_s17  ;;  %s1007_s17 = smov %s779_s22 }
 0x255   : > { %s1008_s18 = smov %s768_s19  ;;  %20 = sbr.rel (!%p18_p1) target bundleno = 6 (0x6), region = 99 }
 0x25a   :  { %380 = vsyncpa [#allocation3], 1 }
 0x25b   :  { %382 = vsyncpa [#allocation3 + $0x1], 1 }
 0x25c   :  { %383 = vsyncpa [#allocation6], 1 }
 0x25d   :  { %385 = vsyncpa [#allocation6 + $0x1], 1 }
 0x25e   :  { %386 = vsyncpa [#allocation4], 1 }
 0x25f   :  { %388 = vsyncpa [#allocation4 + $0x1], 1 }

</bundles_post_ra>
